<compile_context>
chip_gen: v7x
topology: tpu7x:2x2x1
jax: 0.10.0
libtpu: 0.0.40
codegen_flags: <defaults>
</compile_context>

<pallas_src>
import functools

import jax
import jax.numpy as jnp
from jax.experimental import pallas as pl
from jax.experimental.pallas import tpu as pltpu

_LANES = 128
_SUBLANES = 8
_NUM_SPLITS = 2          # leading "parallel" grid axis (2 TensorCores on v7x)


def _round_up(x, m):
    return (x + m - 1) // m * m


# ----------------------------------------------------------------------------
# Fused kernel: cross-entropy + cost-sensitive term, (C, N) lane-dense layout.
# Grid: (split, batch-tile) with semantics ("parallel", "arbitrary").
# ----------------------------------------------------------------------------
def _loss_kernel(data_ref, tgt_ref, c_ref, out_ref, acc_ref, *,
                 n_actual, tile_n, num_classes, tiles_per_split):
    s = pl.program_id(0)        # TensorCore split      ("parallel")
    i = pl.program_id(1)        # batch tile in split   ("arbitrary")

    @pl.when(i == 0)
    def _init():
        acc_ref[...] = jnp.zeros_like(acc_ref)

    x = data_ref[...]           # (C, T) f32 logits, batch on lanes
    tgt = tgt_ref[...]          # (1, T) i32 class indices

    # Lane mask for the zero-padded batch tail (padding is zeros, so no
    # inf/NaN can leak through exp before the mask is applied).
    col = ((s * tiles_per_split + i) * tile_n
           + jax.lax.broadcasted_iota(jnp.int32, (1, tile_n), 1))
    valid = (col < n_actual).astype(jnp.float32)                   # (1, T)

    # Numerically stable log-softmax / softmax along the class (sublane) axis.
    m = jnp.max(x, axis=0, keepdims=True)                          # (1, T)
    e = jnp.exp(x - m)                                             # (C, T)
    ssum = jnp.sum(e, axis=0, keepdims=True)                       # (1, T)
    lse = m + jnp.log(ssum)                                        # (1, T)

    # One-hot pick of x[target[n], n] built in-kernel (no (N, C) one-hot input).
    cls = jax.lax.broadcasted_iota(jnp.int32, (num_classes, tile_n), 0)
    onehot = (cls == tgt).astype(jnp.float32)                      # (C, T)
    picked = jnp.sum(onehot * x, axis=0, keepdims=True)            # (1, T)
    ce_vec = lse - picked                                          # per-sample CE

    # Exact reciprocal (see header note on approx=True vs 1e-5 parity).
    p = e * pl.reciprocal(ssum)                                    # (C, T) softmax

    # cost[k, n] = c[k, target[n]] gathered by a static per-class unroll
    # (pure VPU, exact f32). For num_classes >~ 32-64 replace with a single
    # MXU matmul d = dot(c.T, p) and pick rows with `onehot`.
    cmat = c_ref[...]                                              # (C, C)
    cost = jnp.zeros_like(x)
    for j in range(num_classes):
        sel = (tgt == j).astype(jnp.float32)                       # (1, T)
        cost = cost + cmat[:, j:j + 1] * sel                       # (C,1)*(1,T)
    cs_vec = jnp.sum(p * cost, axis=0, keepdims=True)              # (1, T)

    # Lane-wise accumulation; the cross-lane reduce happens once, in finalize.
    acc_ref[...] = acc_ref[...] + valid * (ce_vec + cs_vec)

    @pl.when(i == pl.num_programs(1) - 1)
    def _finalize():
        total = jnp.sum(acc_ref[...])                              # per-split partial
        row = jax.lax.broadcasted_iota(jnp.int32, (_SUBLANES, _LANES), 0)
        lane = jax.lax.broadcasted_iota(jnp.int32, (_SUBLANES, _LANES), 1)
        out_ref[...] = jnp.where((row == 0) & (lane == 0), total, 0.0)


# ----------------------------------------------------------------------------
# Full module forward: Loss_cost_sensitive_L2(model, weight_decay).forward(...)
# `weight_list` plays the role of Regularization.get_weight(model) ('*weight*'
# parameters); nn.Module parameter discovery has no Pallas equivalent.
# ----------------------------------------------------------------------------
def loss_cost_sensitive_l2(data, target, c, weight_list, weight_decay=0.01, *,
                           tile_n=None):
    data = jnp.asarray(data, jnp.float32)
    target = jnp.asarray(target, jnp.int32)
    c = jnp.asarray(c, jnp.float32)
    n, num_classes = data.shape

    # Batch tiling along the lane axis (multiple of 128 lanes, up to 4096).
    if tile_n is None:
        tile_n = min(4096, _round_up(n, _LANES))
    tile_n = _round_up(tile_n, _LANES)

    total_tiles = pl.cdiv(n, tile_n)
    tiles_per_split = pl.cdiv(total_tiles, _NUM_SPLITS)
    n_pad = _NUM_SPLITS * tiles_per_split * tile_n

    # (C, N) lane-dense layout; XLA fuses transpose + pad into one pass.
    # TODO(synk): have the upstream classifier emit logits as (C, N) directly
    # (swap the final matmul operands) so this wrapper-side transpose vanishes.
    data_t = jnp.pad(data.T, ((0, 0), (0, n_pad - n)))
    tgt_row = jnp.pad(target, (0, n_pad - n)).reshape(1, n_pad)

    kernel = functools.partial(
        _loss_kernel,
        n_actual=n,
        tile_n=tile_n,
        num_classes=num_classes,
        tiles_per_split=tiles_per_split,
    )

    out = pl.pallas_call(
        kernel,
        out_shape=jax.ShapeDtypeStruct((_NUM_SPLITS * _SUBLANES, _LANES),
                                       jnp.float32),
        grid_spec=pltpu.PrefetchScalarGridSpec(
            num_scalar_prefetch=0,
            grid=(_NUM_SPLITS, tiles_per_split),
            in_specs=[
                # logits tile, batch on lanes
                pl.BlockSpec((num_classes, tile_n),
                             lambda s, i: (0, s * tiles_per_split + i)),
                # int32 targets tile (lane-dense row)
                pl.BlockSpec((1, tile_n),
                             lambda s, i: (0, s * tiles_per_split + i)),
                # cost matrix, resident (tiny: C x C f32)
                pl.BlockSpec((num_classes, num_classes), lambda s, i: (0, 0)),
            ],
            out_specs=pl.BlockSpec((_SUBLANES, _LANES), lambda s, i: (s, 0)),
            scratch_shapes=[pltpu.VMEM((1, tile_n), jnp.float32)],
        ),
        compiler_params=pltpu.CompilerParams(
            dimension_semantics=("parallel", "arbitrary"),
        ),
    )(data_t, tgt_row, c)

    # Sum the per-split partial sums (only [0,0] and [8,0] are nonzero).
    batch_term = jnp.sum(out) / jnp.float32(n)

    # Frobenius regularizer: batch-independent and tiny relative to the batch
    # loop, so computed here with plain jnp (per perf review) — keeps kernel
    # VMEM independent of model size and removes the serialized finalize reduce.
    reg = jnp.float32(0.0)
    for w in weight_list:
        w32 = jnp.asarray(w, jnp.float32)
        reg = reg + jnp.sqrt(jnp.sum(w32 * w32))

    return batch_term + jnp.float32(weight_decay) * reg


# ----------------------------------------------------------------------------
# Pure-JAX reference (sanity check of kernel semantics).
# ----------------------------------------------------------------------------
def _reference(data, target, c, weight_list, weight_decay=0.01):
    logits = data.astype(jnp.float32)
    lse = jax.scipy.special.logsumexp(logits, axis=1)
    picked = jnp.take_along_axis(logits, target[:, None], axis=1)[:, 0]
    l1 = jnp.mean(lse - picked)
    p = jax.nn.softmax(logits, axis=1)
    cs = c[:, target].T
    l2 = jnp.mean(jnp.sum(p * cs, axis=1))
    reg = sum(jnp.sqrt(jnp.sum(jnp.asarray(w, jnp.float32) ** 2))
              for w in weight_list)
    return l1 + l2 + weight_decay * reg


if __name__ == "__main__":
    key = jax.random.PRNGKey(0)
    (k_data, k_tgt, k_c, k_w1, k_w2, k_w3,
     k_data2, k_tgt2) = jax.random.split(key, 8)

    C = 10                                       # classes (MNIST-like)
    cost_mat = jax.random.uniform(k_c, (C, C), dtype=jnp.float32)

    # Deterministic synthetic "model" weights (only '*weight*' params regularized):
    # a small MNIST-ish convnet: conv1, conv2, fc weights.
    weight_list = [
        0.1 * jax.random.normal(k_w1, (8, 1, 3, 3), dtype=jnp.float32),   # conv1.weight
        0.1 * jax.random.normal(k_w2, (16, 8, 3, 3), dtype=jnp.float32),  # conv2.weight
        0.1 * jax.random.normal(k_w3, (C, 32), dtype=jnp.float32),        # fc.weight
    ]
    weight_decay = 0.01

    # Small batch (single tile per split).
    N = 8
    data = jax.random.normal(k_data, (N, C), dtype=jnp.float32)
    target = jax.random.randint(k_tgt, (N,), 0, C, dtype=jnp.int32)
    loss = loss_cost_sensitive_l2(data, target, cost_mat, weight_list,
                                  weight_decay)
    loss = jax.block_until_ready(loss)
    ref = _reference(data, target, cost_mat, weight_list, weight_decay)
    assert jnp.allclose(loss, ref, rtol=1e-5, atol=1e-5), (loss, ref)

    # Multi-tile + masked-tail + both-split path (small tile override).
    N2 = 300
    data2 = jax.random.normal(k_data2, (N2, C), dtype=jnp.float32)
    target2 = jax.random.randint(k_tgt2, (N2,), 0, C, dtype=jnp.int32)
    loss2 = loss_cost_sensitive_l2(data2, target2, cost_mat, weight_list,
                                   weight_decay, tile_n=128)
    loss2 = jax.block_until_ready(loss2)
    ref2 = _reference(data2, target2, cost_mat, weight_list, weight_decay)
    assert jnp.allclose(loss2, ref2, rtol=1e-5, atol=1e-5), (loss2, ref2)

    print("KERNEL_OK")
</pallas_src>

<mosaic_0001>
module attributes {stable_mosaic.version = 11 : i64} {
  func.func @_loss_kernel(%arg0: i32, %arg1: i32, %arg2: memref<10x128xf32, #tpu.memory_space<vmem>>, %arg3: memref<1x128xi32, #tpu.memory_space<vmem>>, %arg4: memref<10x10xf32, #tpu.memory_space<vmem>>, %arg5: memref<8x128xf32, #tpu.memory_space<vmem>>, %arg6: memref<1x128xf32, #tpu.memory_space<vmem>>) attributes {dimension_semantics = [#tpu.dimension_semantics<parallel>, #tpu.dimension_semantics<arbitrary>], iteration_bounds = array<i64: 2, 1>, scalar_prefetch = 0 : i64, scratch_operands = 1 : i64, tpu.core_type = #tpu.core_type<tc>, window_params = [{transform_indices = @transform_0, window_bounds = array<i64: 10, 128>}, {transform_indices = @transform_1, window_bounds = array<i64: 1, 128>}, {pipeline_mode = #tpu.pipeline_mode<synchronous>, transform_indices = @transform_2, window_bounds = array<i64: 10, 10>}, {transform_indices = @transform_3, window_bounds = array<i64: 8, 128>}]} {
    %c0_i32 = arith.constant 0 : i32
    %0 = arith.cmpi eq, %arg1, %c0_i32 : i32
    %1 = arith.extui %0 : i1 to i32
    %c0_i32_0 = arith.constant 0 : i32
    %2 = arith.cmpi ne, %1, %c0_i32_0 : i32
    scf.if %2 {
      %cst_19 = arith.constant 0.000000e+00 : f32
      %139 = vector.broadcast %cst_19 : f32 to vector<1x128xf32>
      %c0_20 = arith.constant 0 : index
      %c0_21 = arith.constant 0 : index
      %140 = vector.load %arg6[%c0_20, %c0_21] : memref<1x128xf32, #tpu.memory_space<vmem>>, vector<1x128xf32>
      tpu.vector_store %arg6[%c0_20, %c0_21], %139 {strides = array<i32>} : memref<1x128xf32, #tpu.memory_space<vmem>>, vector<1x128xf32>,
    } else {
    }
    %c0 = arith.constant 0 : index
    %c0_1 = arith.constant 0 : index
    %3 = vector.load %arg2[%c0, %c0_1] : memref<10x128xf32, #tpu.memory_space<vmem>>, vector<10x128xf32>
    %c0_2 = arith.constant 0 : index
    %c0_3 = arith.constant 0 : index
    %4 = vector.load %arg3[%c0_2, %c0_3] : memref<1x128xi32, #tpu.memory_space<vmem>>, vector<1x128xi32>
    %c1_i32 = arith.constant 1 : i32
    %5 = arith.muli %arg0, %c1_i32 : i32
    %6 = arith.addi %5, %arg1 : i32
    %c128_i32 = arith.constant 128 : i32
    %7 = arith.muli %6, %c128_i32 : i32
    %8 = tpu.iota {dimensions = array<i32: 1>} : vector<1x128xi32>
    %9 = vector.broadcast %7 : i32 to vector<1x128xi32>
    %10 = arith.addi %9, %8 : vector<1x128xi32>
    %c8_i32 = arith.constant 8 : i32
    %11 = vector.broadcast %c8_i32 : i32 to vector<1x128xi32>
    %12 = arith.cmpi slt, %10, %11 : vector<1x128xi32>
    %13 = arith.extui %12 : vector<1x128xi1> to vector<1x128xi32>
    %14 = arith.sitofp %13 : vector<1x128xi32> to vector<1x128xf32>
    %cst = arith.constant dense<0xFF800000> : vector<128xf32>
    %15 = vector.multi_reduction <maximumf>, %3, %cst [0] : vector<10x128xf32> to vector<128xf32>
    %16 = vector.shape_cast %15 : vector<128xf32> to vector<1x128xf32>
    %17 = vector.broadcast %16 : vector<1x128xf32> to vector<10x128xf32>
    %18 = arith.subf %3, %17 : vector<10x128xf32>
    %19 = math.exp %18 : vector<10x128xf32>
    %cst_4 = arith.constant dense<0.000000e+00> : vector<128xf32>
    %20 = vector.multi_reduction <add>, %19, %cst_4 [0] : vector<10x128xf32> to vector<128xf32>
    %21 = vector.shape_cast %20 : vector<128xf32> to vector<1x128xf32>
    %22 = math.log %21 : vector<1x128xf32>
    %23 = arith.addf %16, %22 : vector<1x128xf32>
    %24 = tpu.iota {dimensions = array<i32: 0>} : vector<10x128xi32>
    %25 = vector.broadcast %4 : vector<1x128xi32> to vector<10x128xi32>
    %26 = arith.cmpi eq, %24, %25 : vector<10x128xi32>
    %27 = arith.extui %26 : vector<10x128xi1> to vector<10x128xi32>
    %28 = arith.sitofp %27 : vector<10x128xi32> to vector<10x128xf32>
    %29 = arith.mulf %28, %3 : vector<10x128xf32>
    %cst_5 = arith.constant dense<0.000000e+00> : vector<128xf32>
    %30 = vector.multi_reduction <add>, %29, %cst_5 [0] : vector<10x128xf32> to vector<128xf32>
    %31 = vector.shape_cast %30 : vector<128xf32> to vector<1x128xf32>
    %32 = arith.subf %23, %31 : vector<1x128xf32>
    %33 = tpu.reciprocal %21 : vector<1x128xf32> -> vector<1x128xf32>
    %34 = vector.broadcast %33 : vector<1x128xf32> to vector<10x128xf32>
    %35 = arith.mulf %19, %34 : vector<10x128xf32>
    %c0_6 = arith.constant 0 : index
    %c0_7 = arith.constant 0 : index
    %36 = vector.load %arg4[%c0_6, %c0_7] : memref<10x10xf32, #tpu.memory_space<vmem>>, vector<10x10xf32>
    %cst_8 = arith.constant 0.000000e+00 : f32
    %37 = vector.broadcast %cst_8 : f32 to vector<10x128xf32>
    %c0_i32_9 = arith.constant 0 : i32
    %38 = vector.broadcast %c0_i32_9 : i32 to vector<1x128xi32>
    %39 = arith.cmpi eq, %4, %38 : vector<1x128xi32>
    %40 = arith.extui %39 : vector<1x128xi1> to vector<1x128xi32>
    %41 = arith.sitofp %40 : vector<1x128xi32> to vector<1x128xf32>
    %42 = vector.extract_strided_slice %36 {offsets = [0, 0], sizes = [10, 1], strides = [1, 1]} : vector<10x10xf32> to vector<10x1xf32>
    %43 = vector.broadcast %42 : vector<10x1xf32> to vector<10x128xf32>
    %44 = vector.broadcast %41 : vector<1x128xf32> to vector<10x128xf32>
    %45 = arith.mulf %43, %44 : vector<10x128xf32>
    %46 = arith.addf %37, %45 : vector<10x128xf32>
    %c1_i32_10 = arith.constant 1 : i32
    %47 = vector.broadcast %c1_i32_10 : i32 to vector<1x128xi32>
    %48 = arith.cmpi eq, %4, %47 : vector<1x128xi32>
    %49 = arith.extui %48 : vector<1x128xi1> to vector<1x128xi32>
    %50 = arith.sitofp %49 : vector<1x128xi32> to vector<1x128xf32>
    %51 = vector.extract_strided_slice %36 {offsets = [0, 1], sizes = [10, 1], strides = [1, 1]} : vector<10x10xf32> to vector<10x1xf32>
    %52 = vector.broadcast %51 : vector<10x1xf32> to vector<10x128xf32>
    %53 = vector.broadcast %50 : vector<1x128xf32> to vector<10x128xf32>
    %54 = arith.mulf %52, %53 : vector<10x128xf32>
    %55 = arith.addf %46, %54 : vector<10x128xf32>
    %c2_i32 = arith.constant 2 : i32
    %56 = vector.broadcast %c2_i32 : i32 to vector<1x128xi32>
    %57 = arith.cmpi eq, %4, %56 : vector<1x128xi32>
    %58 = arith.extui %57 : vector<1x128xi1> to vector<1x128xi32>
    %59 = arith.sitofp %58 : vector<1x128xi32> to vector<1x128xf32>
    %60 = vector.extract_strided_slice %36 {offsets = [0, 2], sizes = [10, 1], strides = [1, 1]} : vector<10x10xf32> to vector<10x1xf32>
    %61 = vector.broadcast %60 : vector<10x1xf32> to vector<10x128xf32>
    %62 = vector.broadcast %59 : vector<1x128xf32> to vector<10x128xf32>
    %63 = arith.mulf %61, %62 : vector<10x128xf32>
    %64 = arith.addf %55, %63 : vector<10x128xf32>
    %c3_i32 = arith.constant 3 : i32
    %65 = vector.broadcast %c3_i32 : i32 to vector<1x128xi32>
    %66 = arith.cmpi eq, %4, %65 : vector<1x128xi32>
    %67 = arith.extui %66 : vector<1x128xi1> to vector<1x128xi32>
    %68 = arith.sitofp %67 : vector<1x128xi32> to vector<1x128xf32>
    %69 = vector.extract_strided_slice %36 {offsets = [0, 3], sizes = [10, 1], strides = [1, 1]} : vector<10x10xf32> to vector<10x1xf32>
    %70 = vector.broadcast %69 : vector<10x1xf32> to vector<10x128xf32>
    %71 = vector.broadcast %68 : vector<1x128xf32> to vector<10x128xf32>
    %72 = arith.mulf %70, %71 : vector<10x128xf32>
    %73 = arith.addf %64, %72 : vector<10x128xf32>
    %c4_i32 = arith.constant 4 : i32
    %74 = vector.broadcast %c4_i32 : i32 to vector<1x128xi32>
    %75 = arith.cmpi eq, %4, %74 : vector<1x128xi32>
    %76 = arith.extui %75 : vector<1x128xi1> to vector<1x128xi32>
    %77 = arith.sitofp %76 : vector<1x128xi32> to vector<1x128xf32>
    %78 = vector.extract_strided_slice %36 {offsets = [0, 4], sizes = [10, 1], strides = [1, 1]} : vector<10x10xf32> to vector<10x1xf32>
    %79 = vector.broadcast %78 : vector<10x1xf32> to vector<10x128xf32>
    %80 = vector.broadcast %77 : vector<1x128xf32> to vector<10x128xf32>
    %81 = arith.mulf %79, %80 : vector<10x128xf32>
    %82 = arith.addf %73, %81 : vector<10x128xf32>
    %c5_i32 = arith.constant 5 : i32
    %83 = vector.broadcast %c5_i32 : i32 to vector<1x128xi32>
    %84 = arith.cmpi eq, %4, %83 : vector<1x128xi32>
    %85 = arith.extui %84 : vector<1x128xi1> to vector<1x128xi32>
    %86 = arith.sitofp %85 : vector<1x128xi32> to vector<1x128xf32>
    %87 = vector.extract_strided_slice %36 {offsets = [0, 5], sizes = [10, 1], strides = [1, 1]} : vector<10x10xf32> to vector<10x1xf32>
    %88 = vector.broadcast %87 : vector<10x1xf32> to vector<10x128xf32>
    %89 = vector.broadcast %86 : vector<1x128xf32> to vector<10x128xf32>
    %90 = arith.mulf %88, %89 : vector<10x128xf32>
    %91 = arith.addf %82, %90 : vector<10x128xf32>
    %c6_i32 = arith.constant 6 : i32
    %92 = vector.broadcast %c6_i32 : i32 to vector<1x128xi32>
    %93 = arith.cmpi eq, %4, %92 : vector<1x128xi32>
    %94 = arith.extui %93 : vector<1x128xi1> to vector<1x128xi32>
    %95 = arith.sitofp %94 : vector<1x128xi32> to vector<1x128xf32>
    %96 = vector.extract_strided_slice %36 {offsets = [0, 6], sizes = [10, 1], strides = [1, 1]} : vector<10x10xf32> to vector<10x1xf32>
    %97 = vector.broadcast %96 : vector<10x1xf32> to vector<10x128xf32>
    %98 = vector.broadcast %95 : vector<1x128xf32> to vector<10x128xf32>
    %99 = arith.mulf %97, %98 : vector<10x128xf32>
    %100 = arith.addf %91, %99 : vector<10x128xf32>
    %c7_i32 = arith.constant 7 : i32
    %101 = vector.broadcast %c7_i32 : i32 to vector<1x128xi32>
    %102 = arith.cmpi eq, %4, %101 : vector<1x128xi32>
    %103 = arith.extui %102 : vector<1x128xi1> to vector<1x128xi32>
    %104 = arith.sitofp %103 : vector<1x128xi32> to vector<1x128xf32>
    %105 = vector.extract_strided_slice %36 {offsets = [0, 7], sizes = [10, 1], strides = [1, 1]} : vector<10x10xf32> to vector<10x1xf32>
    %106 = vector.broadcast %105 : vector<10x1xf32> to vector<10x128xf32>
    %107 = vector.broadcast %104 : vector<1x128xf32> to vector<10x128xf32>
    %108 = arith.mulf %106, %107 : vector<10x128xf32>
    %109 = arith.addf %100, %108 : vector<10x128xf32>
    %c8_i32_11 = arith.constant 8 : i32
    %110 = vector.broadcast %c8_i32_11 : i32 to vector<1x128xi32>
    %111 = arith.cmpi eq, %4, %110 : vector<1x128xi32>
    %112 = arith.extui %111 : vector<1x128xi1> to vector<1x128xi32>
    %113 = arith.sitofp %112 : vector<1x128xi32> to vector<1x128xf32>
    %114 = vector.extract_strided_slice %36 {offsets = [0, 8], sizes = [10, 1], strides = [1, 1]} : vector<10x10xf32> to vector<10x1xf32>
    %115 = vector.broadcast %114 : vector<10x1xf32> to vector<10x128xf32>
    %116 = vector.broadcast %113 : vector<1x128xf32> to vector<10x128xf32>
    %117 = arith.mulf %115, %116 : vector<10x128xf32>
    %118 = arith.addf %109, %117 : vector<10x128xf32>
    %c9_i32 = arith.constant 9 : i32
    %119 = vector.broadcast %c9_i32 : i32 to vector<1x128xi32>
    %120 = arith.cmpi eq, %4, %119 : vector<1x128xi32>
    %121 = arith.extui %120 : vector<1x128xi1> to vector<1x128xi32>
    %122 = arith.sitofp %121 : vector<1x128xi32> to vector<1x128xf32>
    %123 = vector.extract_strided_slice %36 {offsets = [0, 9], sizes = [10, 1], strides = [1, 1]} : vector<10x10xf32> to vector<10x1xf32>
    %124 = vector.broadcast %123 : vector<10x1xf32> to vector<10x128xf32>
    %125 = vector.broadcast %122 : vector<1x128xf32> to vector<10x128xf32>
    %126 = arith.mulf %124, %125 : vector<10x128xf32>
    %127 = arith.addf %118, %126 : vector<10x128xf32>
    %128 = arith.mulf %35, %127 : vector<10x128xf32>
    %cst_12 = arith.constant dense<0.000000e+00> : vector<128xf32>
    %129 = vector.multi_reduction <add>, %128, %cst_12 [0] : vector<10x128xf32> to vector<128xf32>
    %130 = vector.shape_cast %129 : vector<128xf32> to vector<1x128xf32>
    %c0_13 = arith.constant 0 : index
    %c0_14 = arith.constant 0 : index
    %131 = vector.load %arg6[%c0_13, %c0_14] : memref<1x128xf32, #tpu.memory_space<vmem>>, vector<1x128xf32>
    %132 = arith.addf %32, %130 : vector<1x128xf32>
    %133 = arith.mulf %14, %132 : vector<1x128xf32>
    %134 = arith.addf %131, %133 : vector<1x128xf32>
    %c0_15 = arith.constant 0 : index
    %c0_16 = arith.constant 0 : index
    %135 = vector.load %arg6[%c0_15, %c0_16] : memref<1x128xf32, #tpu.memory_space<vmem>>, vector<1x128xf32>
    tpu.vector_store %arg6[%c0_15, %c0_16], %134 {strides = array<i32>} : memref<1x128xf32, #tpu.memory_space<vmem>>, vector<1x128xf32>,
    %c0_i32_17 = arith.constant 0 : i32
    %136 = arith.cmpi eq, %arg1, %c0_i32_17 : i32
    %137 = arith.extui %136 : i1 to i32
    %c0_i32_18 = arith.constant 0 : i32
    %138 = arith.cmpi ne, %137, %c0_i32_18 : i32
    scf.if %138 {
      %c0_19 = arith.constant 0 : index
      %c0_20 = arith.constant 0 : index
      %139 = vector.load %arg6[%c0_19, %c0_20] : memref<1x128xf32, #tpu.memory_space<vmem>>, vector<1x128xf32>
      %140 = vector.shape_cast %139 : vector<1x128xf32> to vector<1x1x128xf32>
      %cst_21 = arith.constant dense<0.000000e+00> : vector<1xf32>
      %141 = vector.multi_reduction <add>, %140, %cst_21 [1, 2] : vector<1x1x128xf32> to vector<1xf32>
      %142 = vector.shape_cast %141 : vector<1xf32> to vector<1x1x1xf32>
      %143 = vector.extract %142[0, 0, 0] : f32 from vector<1x1x1xf32>
      %144 = tpu.iota {dimensions = array<i32: 0>} : vector<8x128xi32>
      %145 = tpu.iota {dimensions = array<i32: 1>} : vector<8x128xi32>
      %c0_i32_22 = arith.constant 0 : i32
      %146 = vector.broadcast %c0_i32_22 : i32 to vector<8x128xi32>
      %147 = arith.cmpi eq, %144, %146 : vector<8x128xi32>
      %c0_i32_23 = arith.constant 0 : i32
      %148 = vector.broadcast %c0_i32_23 : i32 to vector<8x128xi32>
      %149 = arith.cmpi eq, %145, %148 : vector<8x128xi32>
      %150 = arith.andi %147, %149 : vector<8x128xi1>
      %cst_24 = arith.constant 0.000000e+00 : f32
      %151 = vector.broadcast %143 : f32 to vector<8x128xf32>
      %152 = vector.broadcast %cst_24 : f32 to vector<8x128xf32>
      %153 = arith.select %150, %151, %152 : vector<8x128xi1>, vector<8x128xf32>
      %c0_25 = arith.constant 0 : index
      %c0_26 = arith.constant 0 : index
      %154 = vector.load %arg5[%c0_25, %c0_26] : memref<8x128xf32, #tpu.memory_space<vmem>>, vector<8x128xf32>
      tpu.vector_store %arg5[%c0_25, %c0_26], %153 {strides = array<i32>} : memref<8x128xf32, #tpu.memory_space<vmem>>, vector<8x128xf32>,
    } else {
    }
    return
  }
  func.func @transform_0(%arg0: i32, %arg1: i32) -> (i32, i32) {
    %c1_i32 = arith.constant 1 : i32
    %0 = arith.muli %arg0, %c1_i32 : i32
    %1 = arith.addi %0, %arg1 : i32
    %c0_i32 = arith.constant 0 : i32
    %c0_i32_0 = arith.constant 0 : i32
    return %c0_i32, %1 : i32, i32
  }
  func.func @transform_1(%arg0: i32, %arg1: i32) -> (i32, i32) {
    %c1_i32 = arith.constant 1 : i32
    %0 = arith.muli %arg0, %c1_i32 : i32
    %1 = arith.addi %0, %arg1 : i32
    %c0_i32 = arith.constant 0 : i32
    %c0_i32_0 = arith.constant 0 : i32
    return %c0_i32, %1 : i32, i32
  }
  func.func @transform_2(%arg0: i32, %arg1: i32) -> (i32, i32) {
    %c0_i32 = arith.constant 0 : i32
    %c0_i32_0 = arith.constant 0 : i32
    %c0_i32_1 = arith.constant 0 : i32
    return %c0_i32, %c0_i32_0 : i32, i32
  }
  func.func @transform_3(%arg0: i32, %arg1: i32) -> (i32, i32) {
    %c0_i32 = arith.constant 0 : i32
    %c0_i32_0 = arith.constant 0 : i32
    return %arg0, %c0_i32 : i32, i32
  }
}

</mosaic_0001>

<bundles_post_ra>
// kernel: tpu_custom_call.1
= control target key start
LH: loop header
LB: loop body
LE: loop exit
PB: predicated region body
PF: predicated region fallthrough
CT: control target
= control target key end

     0   :  { %8 = vsyncpa [#allocation4], 0  ;;  %s1311_s0 = inlined_call_operand.hbm [shape: f32[10,256], index: 0, kind: input, shape index: {}]   ;;  %s1312_s1 = inlined_call_operand.vmem [shape: s32[1,256], index: 1, kind: input, shape index: {}]   ;;  %s1313_s2 = inlined_call_operand.hbm [shape: f32[10,10], index: 2, kind: input, shape index: {}]   ;;  %s1314_s3 = inlined_call_operand.hbm [shape: f32[16,128], index: 3, kind: output, shape index: {}]  }
   0x1   :  { %10 = vsyncpa [#allocation4 + $0x1], 0 }
   0x2   :  { %11 = vsyncpa [#allocation7], 0 }
   0x3   :  { %12 = vsyncpa [#allocation5], 0 }
   0x4   :  { %14 = vsyncpa [#allocation5 + $0x1], 0  ;;  %s999_s12 = smov 0   ;;  %s1001_s13 = smov 0  }
   0x5   :  { %s1003_s14 = smov 0   ;;  %s1005_s15 = smov 0  }
   0x6   :  { %s1007_s16 = smov 0   ;;  %s1009_s17 = smov 0  }
   0x7 LB: > { %s672_s18 = sadd.s32 4294967295, %s960_s17   ;;  %s673_s19 = sadd.s32 4294967294, %s960_s17   ;;  %s960_s17 = sphi %s1009_s17, %s20_s17   ;;  %s956_s16 = sphi %s1007_s16, %s1342_s16   ;;  %s952_s15 = sphi %s1005_s15, %s1341_s15   ;;  %s948_s14 = sphi %s1003_s14, %s1340_s14   ;;  %s944_s13 = sphi %s1001_s13, %s1339_s13   ;;  %s940_s12 = sphi %s999_s12, %s1338_s12  }
   0x8   : > { %p48_p0 = scmp.ne.s32.totalorder %s948_s14, %s944_s13  ;;  %p49_p1 = scmp.eq.s32.totalorder %s960_s17, 0 }
   0x9   : > { %p54_p2 = scmp.ne.s32.totalorder %s944_s13, %s940_s12  ;;  %p1036_p3 = scmp.eq.s32.totalorder %s672_s18, 0 }
   0xa   : > { %p1040_p4 = por %p49_p1, %p48_p0  ;;  %p127_p5 = scmp.eq.s32.totalorder %s672_s18, 1 }
   0xb   : > { %s1322_s20 = scalar_select %p1036_p3, 1, 0 }
   0xc   : > { %p1046_p6 = por %p1036_p3, %p54_p2  ;;  %p133_p7 = scmp.eq.s32.totalorder %s673_s19, 1 }
   0xd   : > { %p1050_p8 = por %p127_p5, %p48_p0  ;;  %p674_p9 = scmp.ge.s32.totalorder %s960_s17, 1 }
   0xe   : > { %s1324_s22 = scalar_select %p1046_p6, 1, 0 }
   0xf   : > { %s1325_s23 = scalar_select %p1050_p8, 1, 0 }
  0x10   : > { %p1055_p10 = por %p133_p7, %p54_p2  ;;  %p140_p11 = scmp.lt.s32.totalorder %s960_s17, 3 }
  0x11   : > { %s962_s26 = smov [#allocation6]   ;;  %p724_p1 = scmp.lt.s32.totalorder %s960_s17, 2 }
  0x12   : > { %s1326_s24 = scalar_select %p1055_p10, 1, 0 }
  0x13   : > { %p1060_p12 = pnand %p674_p9, %p140_p11  ;;  %s152_s27 = sshll.u32 %s962_s26, 4  ;;  %s1064_s27 = int_to_ptr.vmem [resolvable:$true] %s152_s27 }
  0x14   : > { %p1078_p2 = pnand %p724_p1, %p1040_p4  ;;  %s32_s30 = sadd.s32 1, %s956_s16 }
  0x15   : > { %s1327_s25 = scalar_select %p1060_p12, 1, 0 }
  0x16   : > { %p711_p13 = pneg %p1060_p12  ;;  %s816_s6 = scalar_lea.hbm %s1313_s2, 256 }
  0x17   : > { %s1329_s29 = scalar_select %p1078_p2, 1, 0 }
  0x18   : > { %p1072_p5 = pnand %p711_p13, %p1036_p3  ;;  %p817_p7 = scmp.ne.s32.totalorder %s1313_s2, %s816_s6 }
  0x19   : > { %p823_p4 = scmp.lt.u32.totalorder %s816_s6, %s1313_s2 }
  0x1a   : > { %p818_p9 = pneg %p1072_p5 }
  0x1c   : > { %p819_p11 = pnand %p818_p9, %p817_p7 }
  0x1e   : > { %p820_p13 = pneg %p819_p11 }
  0x20   : > { %p825_p1 = pnand %p823_p4, %p820_p13 }
  0x22   : > { %828 = shalt.err (!%p825_p1)
}
  0x23   : > { %s829_s11 = scalar_lea.vmem %s1064_s27, 256  ;;  %p837_p3 = scmp.lt.s32.totalorder %s1064_s27, %s1064_s27 }
  0x24   : > { %p830_p0 = scmp.ne.s32.totalorder %s1064_s27, %s829_s11  ;;  %p838_p6 = scmp.lt.s32.totalorder %s829_s11, %s829_s11 }
  0x26   : > { %p832_p10 = pnand %p830_p0, %p818_p9  ;;  %p839_p12 = por %p838_p6, %p837_p3 }
  0x28   : > { %p833_p8 = pneg %p832_p10 }
  0x2a   : > { %p840_p2 = pnand %p839_p12, %p833_p8 }
  0x2c   : > { %843 = shalt.err (!%p840_p2)
}
  0x2d   : > { %s1321_s18 = smov 128   ;;  %s964_s19 = smov 8  }
  0x2e   : > { %714 = dma.hbm_to_vmem [thread:$0]  (!%p1072_p5), %s1313_s2, 256, %s1064_s27, [#allocation7], %s1321_s18, %s1321_s18, %s964_s19  }
  0x2f   : > { %p34_p3 = scmp.ge.s32.totalorder %s32_s30, 2  ;;  %s41_s4 = sadd.s32 1, %s948_s14 }
  0x30   : > { %s166_s5 = sand.u32 1, %s948_s14   ;;  %s678_s8 = sshll.u32 %s956_s16, 7 }
  0x31   : > { %s1344_s30 = smov (%p34_p3, %s32_s30), 0  ;;  %s677_s6 = sshll.u32 %s166_s5, 4 }
  0x32   : > { %s38_s7 = ssub.s32 %s956_s16, %s1344_s30  ;;  %s1117_s10 = scalar_lea.hbm %s1311_s0, %s678_s8 }
  0x33   : > { %p39_p6 = scmp.eq.s32.totalorder %s38_s7, 0  ;;  %s170_s27 = scalar_lea.vmem [#allocation3], %s677_s6 }
  0x34   : > { %s177_s11 = sshll.u32 %s170_s27, 4  ;;  %s1124_s26 = scalar_lea.sflag [#allocation4], %s166_s5  ;;  %s1122_s11 = int_to_ptr.vmem [resolvable:$true] %s177_s11 }
  0x35   : > { %s1120_s21 = scalar_select %p39_p6, %s948_s14, %s41_s4  }
  0x36   : > { %s844_s18 = scalar_lea.hbm %s1117_s10, 256  ;;  %p1330_p10 = scmp.ne.s32.totalorder %s1329_s29, 0 }
  0x37   : > { %p845_p8 = scmp.ne.s32.totalorder %s1117_s10, %s844_s18  ;;  %s849_s28 = scalar_lea.hbm %s1311_s0, 512 }
  0x38   : > { %p846_p12 = pneg %p1330_p10  ;;  %p850_p2 = scmp.lt.u32.totalorder %s1117_s10, %s1311_s0 }
  0x39   : > { %p851_p7 = scmp.lt.u32.totalorder %s849_s28, %s844_s18  ;;  %p853_p11 = scmp.lt.u32.totalorder %s844_s18, %s1117_s10 }
  0x3a   : > { %p847_p0 = pnand %p846_p12, %p845_p8 }
  0x3b   : > { %p852_p9 = por %p851_p7, %p850_p2 }
  0x3c   : > { %p848_p5 = pneg %p847_p0 }
  0x3d   : > { %p854_p13 = por %p853_p11, %p852_p9 }
  0x3f   : > { %p855_p4 = pnand %p854_p13, %p848_p5 }
  0x41   : > { %858 = shalt.err (!%p855_p4)
}
  0x42   : > { %s859_s4 = scalar_lea.vmem %s1122_s11, 256  ;;  %s965_s5 = smov [#allocation3]  }
  0x43   : > { %p860_p1 = scmp.ne.s32.totalorder %s1122_s11, %s859_s4  ;;  %s864_s27 = sshll.u32 %s965_s5, 4  ;;  %s865_s27 = int_to_ptr.vmem [resolvable:$false] %s864_s27 }
  0x44   : > { %s866_s7 = scalar_lea.vmem %s865_s27, 512  ;;  %p867_p8 = scmp.lt.s32.totalorder %s1122_s11, %s865_s27 }
  0x45   : > { %p862_p3 = pnand %p860_p1, %p846_p12  ;;  %p868_p0 = scmp.lt.s32.totalorder %s866_s7, %s859_s4 }
  0x47   : > { %p863_p6 = pneg %p862_p3  ;;  %p869_p2 = por %p868_p0, %p867_p8 }
  0x49   : > { %p870_p7 = pnand %p869_p2, %p863_p6 }
  0x4b   : > { %873 = shalt.err (!%p870_p7)
}
  0x4c   : > { %s966_s18 = smov 256   ;;  %s1331_s8 = smov 128  }
  0x4d   : > { %718 = dma.hbm_to_vmem [thread:$0]  (!%p1330_p10), %s1117_s10, 256, %s1122_s11, %s1124_s26, %s966_s18, %s1331_s8, %s964_s19  }
  0x4e   : > { %p1332_p12 = scmp.ne.s32.totalorder %s1327_s25, 0 }
  0x4f   : > { %s1157_s28 = sand.u32 (!%p1332_p12), 1, %s944_s13   ;;  %p1333_p5 = scmp.ne.s32.totalorder (!%p1332_p12), %s1324_s22, 0 }
  0x50   : > { %197 = sbr.rel (%p1332_p12) target bundleno = 533 (0x215), region = 32  ;;  %s680_s6 = sshll.u32 (!%p1332_p12), %s1157_s28, 4 }
  0x51   : > { %s200_s9 = scalar_lea.sflag (!%p1332_p12), [#allocation4], %s1157_s28  ;;  %s1161_s4 = scalar_lea.vmem (!%p1332_p12), [#allocation3], %s680_s6 }
  0x57   : > { %927 = dma.done.wait (%p1333_p5), %s200_s9, 256  }
  0x58   : > { %929 = vsyncadd (%p1333_p5), %s200_s9, 4294967040  ;;  %p1334_p10 = scmp.ne.s32.totalorder %s1322_s20, 0 }
  0x5a   : > { %931 = dma.done.wait (%p1334_p10), [#allocation7], 256  }
  0x5b   : > { %933 = vsyncadd (%p1334_p10), [#allocation7], 4294967040  ;;  %v967_v0 = vmov 0   ;;  %v968_v1 = vmov 0.0   ;;  %v311_v2 = vld [vmem:[#allocation6 + $0x8] sm:$0x3]  ;;  %v250_v35 = vlaneseq }
  0x5c   : > { %792 = vset.pattern.permute.xlu1 %v967_v0  ;;  %790 = vset.pattern.permute.xlu0 %v967_v0  ;;  %244 = vst [vmem:[#allocation2] sm:$0x1] %v968_v1  ;;  %v310_v3 = vld [vmem:[#allocation6] sm:$0xff]  ;;  %v969_v4 = vmov 1   ;;  %v970_v5 = vmov 2   ;;  %v971_v6 = vmov 3  }
  0x5d   : > { %322 = vperm.xlu0 %790, %v311_v2   ;;  %317 = vperm.xlu1 %792, %v310_v3   ;;  %v972_v7 = vmov 4   ;;  %v973_v8 = vmov 5   ;;  %v974_v9 = vmov 7   ;;  %v975_v10 = vmov 8   ;;  %v1173_v13 = vld [vmem:[%s1161_s4 + $0x8] sm:$0x3] }
  0x5e   : > { %v976_v11 = vmov 6   ;;  %v977_v12 = vmov 9   ;;  %vm257_vm0 = vcmask 1041408   ;;  %v1176_v14 = vld [vmem:[%s1161_s4] sm:$0xff]  ;;  %p236_p9 = scmp.lt.s32.totalorder %s952_s15, 1  ;;  %v1202_v39 = vshrl.u32 %v250_v35, 7 }
  0x5f   : > { %v258_v15 = vsel %vm257_vm0, %v1173_v13, -inf  ;;  %s683_s19 = sshll.u32 %s952_s15, 7  ;;  %vm543_vm14 = vcmask 1040384   ;;  %s682_s10 = sshll.u32 %s1157_s28, 3 }
  0x60   : > { %v259_v16 = vmax.f32 %v1176_v14, %v258_v15  ;;  %s237_s20 = scalar_select %p236_p9, %s952_s15, 1  ;;  %v1207_v42 = vsub.s32 0, %v1202_v39  ;;  %v285_v51 = vadd.s32 8, %v1202_v39  ;;  %vm554_vm15 = vcmp.eq.s32.totalorder %v1202_v39, 0 }
  0x61   : > { %791 = vset.pattern.permute.xlu0 %v969_v4  ;;  %793 = vset.pattern.permute.xlu1 %v969_v4  ;;  %s233_s11 = scalar_lea.vmem [#allocation8], %s682_s10  ;;  %s1262_s18 = scalar_lea.hbm %s1314_s3, %s683_s19 }
  0x62   : > { %343 = vperm.xlu0 %791, %v311_v2   ;;  %339 = vperm.xlu1 %793, %v310_v3   ;;  %v260_v17 = vrot.slane %v259_v16, 4  ;;  %s238_s29 = scalar_lea.vmem %s1312_s1, %s237_s20  ;;  %s574_s26 = sshll.u32 %s233_s11, 4  ;;  %s1264_s26 = int_to_ptr.vmem [resolvable:$true] %s574_s26 }
  0x63   : > { %v1199_v37 = vld [vmem:[%s238_s29] sm:$0x1]  ;;  %s561_s8 = scalar_lea.sflag [#allocation5], %s1157_s28  ;;  %s874_s6 = scalar_lea.vmem %s1264_s26, 128 }
  0x64   : > { %v261_v18 = vmax.f32 %v259_v16, %v260_v17  ;;  %vm312_vm1 = vcmp.eq.s32.totalorder %v1199_v37, 0  ;;  %vm335_vm2 = vcmp.eq.s32.totalorder %v1199_v37, 1  ;;  %vm356_vm3 = vcmp.eq.s32.totalorder %v1199_v37, 2  ;;  %p875_p11 = scmp.ne.s32.totalorder %s1264_s26, %s874_s6  ;;  %p1335_p13 = scmp.ne.s32.totalorder %s1325_s23, 0 }
  0x65   : > { %v687_v44 = vsel %vm312_vm1, 1.0, %v968_v1  ;;  %v688_v45 = vsel %vm335_vm2, 1.0, %v968_v1  ;;  %vm377_vm4 = vcmp.eq.s32.totalorder %v1199_v37, 3  ;;  %v689_v48 = vsel %vm356_vm3, 1.0, %v968_v1  ;;  %s978_s9 = smov [#allocation8]  }
  0x66   : > { %795 = vset.pattern.permute.xlu0 %v970_v5  ;;  %794 = vset.pattern.permute.xlu1 %v970_v5  ;;  %v262_v19 = vrot.slane %v261_v18, 2  ;;  %v329_v49 = vrot.slane %v687_v44, %v1207_v42  ;;  %v350_v50 = vrot.slane %v688_v45, %v1207_v42  ;;  %v289_v52 = vrot.slane %v1199_v37, %v1207_v42  ;;  %p876_p4 = pnand %p875_p11, %p1335_p13  ;;  %s878_s15 = sshll.u32 %s978_s9, 4  ;;  %s879_s15 = int_to_ptr.vmem [resolvable:$false] %s878_s15 }
  0x67   : > { %360 = vperm.xlu0 %795, %v310_v3   ;;  %364 = vperm.xlu1 %794, %v311_v2   ;;  %v690_v53 = vsel %vm377_vm4, 1.0, %v968_v1  ;;  %vm398_vm5 = vcmp.eq.s32.totalorder %v1199_v37, 4  ;;  %v371_v58 = vrot.slane %v689_v48, %v1207_v42  ;;  %vm419_vm6 = vcmp.eq.s32.totalorder %v1199_v37, 5  ;;  %s880_s4 = scalar_lea.vmem %s879_s15, 256  ;;  %p881_p3 = scmp.lt.s32.totalorder %s1264_s26, %s879_s15 }
  0x68   : > { %v263_v20 = vmax.f32 %v261_v18, %v262_v19  ;;  %v392_v59 = vrot.slane %v690_v53, %v1207_v42  ;;  %v691_v60 = vsel %vm398_vm5, 1.0, %v968_v1  ;;  %vm291_vm7 = vcmp.eq.s32.totalorder %v285_v51, %v289_v52  ;;  %p877_p1 = pneg %p876_p4  ;;  %p882_p6 = scmp.lt.s32.totalorder %s880_s4, %s874_s6 }
  0x69   : > { %vm440_vm8 = vcmp.eq.s32.totalorder %v1199_v37, 6  ;;  %vm290_vm9 = vcmp.eq.s32.totalorder %v1202_v39, %v289_v52  ;;  %v692_v4 = vsel %vm419_vm6, 1.0, %v968_v1  ;;  %v686_v5 = vsel %vm291_vm7, 1.0, %v968_v1 }
  0x6a   : > { %v264_v21 = vrot.slane %v263_v20, 1  ;;  %vm461_vm10 = vcmp.eq.s32.totalorder %v1199_v37, 7  ;;  %v297_v18 = vmul.f32 %v686_v5, %v1173_v13  ;;  %v434_v19 = vrot.slane %v692_v4, %v1207_v42  ;;  %p883_p8 = por %p882_p6, %p881_p3 }
  0x6b   : > { %796 = vset.pattern.permute.xlu1 %v971_v6  ;;  %797 = vset.pattern.permute.xlu0 %v972_v7  ;;  %vm482_vm11 = vcmp.eq.s32.totalorder %v1199_v37, 8  ;;  %vm503_vm12 = vcmp.eq.s32.totalorder %v1199_v37, 9 }
  0x6c   : > { %385 = vperm.xlu1 %796, %v311_v2   ;;  %406 = vperm.xlu0 %797, %v311_v2   ;;  %v1181_v22 = vmax.f32 %v263_v20, %v264_v21  ;;  %v694_v21 = vsel %vm461_vm10, 1.0, %v968_v1  ;;  %v695_v45 = vsel %vm482_vm11, 1.0, %v968_v1  ;;  %p884_p0 = pnand %p883_p8, %p877_p1 }
  0x6d   : > { %v497_v52 = vrot.slane %v695_v45, %v1207_v42 }
  0x6e   : > { %v267_v23 = vsub.f32 %v1173_v13, %v1181_v22  ;;  %v266_v24 = vsub.f32 %v1176_v14, %v1181_v22  ;;  %v298_v13 = vsel %vm257_vm0, %v297_v18, 0.0 }
  0x70   : > { %381 = vperm.xlu1 %796, %v310_v3   ;;  %800 = vset.pattern.permute.xlu0 %v973_v8  ;;  %v270_v25 = vmul.f32 1.442695, %v267_v23  ;;  %v268_v26 = vmul.f32 1.442695, %v266_v24 }
  0x71   : > { %423 = vperm.xlu0 %800, %v310_v3  }
  0x72   : > { %808 = vpow2.f32 %v270_v25 }
  0x73   : > { %810 = vpow2.f32 %v268_v26 }
  0x74   : > { %798 = vset.pattern.permute.xlu1 %v972_v7 }
  0x75   : > { %402 = vperm.xlu1 %798, %v310_v3   ;;  %802 = vset.pattern.permute.xlu0 %v974_v9 }
  0x76   : > { %469 = vperm.xlu0 %802, %v311_v2  }
  0x79   : > { %799 = vset.pattern.permute.xlu1 %v973_v8  ;;  %v693_v8 = vsel %vm440_vm8, 1.0, %v968_v1 }
  0x7a   : > { %427 = vperm.xlu1 %799, %v311_v2   ;;  %805 = vset.pattern.permute.xlu0 %v975_v10  ;;  %v455_v20 = vrot.slane %v693_v8, %v1207_v42 }
  0x7b   : > { %486 = vperm.xlu0 %805, %v310_v3  }
  0x7c   : > { %v1187_v29 = vpop.eup %808 }
  0x7d   : > { %v1190_v30 = vpop.eup %810  ;;  %v272_v32 = vsel %vm257_vm0, %v1187_v29, 0.0 }
  0x7e   : > { %801 = vset.pattern.permute.xlu1 %v976_v11  ;;  %v273_v33 = vadd.f32 %v1190_v30, %v272_v32  ;;  %v685_v11 = vsel %vm290_vm9, 1.0, %v968_v1 }
  0x7f   : > { %448 = vperm.xlu1 %801, %v311_v2   ;;  %807 = vset.pattern.permute.xlu0 %v977_v12 }
  0x80   : > { %v274_v36 = vrot.slane %v273_v33, 4 }
  0x82   : > { %v275_v41 = vadd.f32 %v274_v36, %v273_v33 }
  0x83   : > { %444 = vperm.xlu1 %801, %v310_v3  }
  0x84   : > { %v276_v46 = vrot.slane %v275_v41, 2 }
  0x86   : > { %v277_v55 = vadd.f32 %v276_v46, %v275_v41 }
  0x87   : > { %803 = vset.pattern.permute.xlu1 %v974_v9 }
  0x88   : > { %465 = vperm.xlu1 %803, %v310_v3   ;;  %v278_v62 = vrot.slane %v277_v55, 1 }
  0x8c   : > { %804 = vset.pattern.permute.xlu1 %v975_v10  ;;  %v279_v10 = vadd.f32 %v278_v62, %v277_v55 }
  0x8d   : > { %490 = vperm.xlu1 %804, %v311_v2  }
  0x8e   : > { %812 = vrcp.f32 %v279_v10 }
  0x8f   : > { %814 = vlog2.f32 %v279_v10 }
  0x91   : > { %806 = vset.pattern.permute.xlu1 %v977_v12 }
  0x92   : > { %511 = vperm.xlu1 %806, %v311_v2  }
  0x96   : > { %507 = vperm.xlu1 %806, %v310_v3   ;;  %v413_v3 = vrot.slane %v691_v60, %v1207_v42 }
  0xdc   : > { %v318_v27 = vpop.permute.xlu1 %317  ;;  %v323_v40 = vpop.permute.xlu0 %322 }
  0xdd   : > { %v332_v56 = vmul.f32 %v329_v49, %v323_v40  ;;  %v331_v12 = vmul.f32 %v329_v49, %v318_v27  ;;  %v296_v27 = vmul.f32 %v685_v11, %v1176_v14 }
  0xdf   : > { %v299_v46 = vadd.f32 %v298_v13, %v296_v27 }
  0xe1   : > { %v340_v28 = vpop.permute.xlu1 %339  ;;  %v344_v47 = vpop.permute.xlu0 %343 }
  0xe2   : > { %v353_v57 = vmul.f32 %v350_v50, %v344_v47  ;;  %v352_v6 = vmul.f32 %v350_v50, %v340_v28 }
  0xe4   : > { %v355_v63 = vadd.f32 %v353_v57, %v332_v56  ;;  %v354_v23 = vadd.f32 %v352_v6, %v331_v12 }
  0xe6   : > { %v365_v31 = vpop.permute.xlu1 %364  ;;  %v361_v61 = vpop.permute.xlu0 %360 }
  0xe7   : > { %v374_v0 = vmul.f32 %v371_v58, %v365_v31  ;;  %v373_v15 = vmul.f32 %v371_v58, %v361_v61  ;;  %v813_v58 = vpop.eup %812 }
  0xe8   : > { %v309_v5 = vmul.f32 %v813_v58, %v1187_v29 }
  0xe9   : > { %v376_v16 = vadd.f32 %v374_v0, %v355_v63  ;;  %v375_v31 = vadd.f32 %v373_v15, %v354_v23 }
  0xeb   : > { %v386_v34 = vpop.permute.xlu1 %385  ;;  %v407_v9 = vpop.permute.xlu0 %406 }
  0xec   : > { %v395_v7 = vmul.f32 %v392_v59, %v386_v34  ;;  %v416_v25 = vmul.f32 %v413_v3, %v407_v9  ;;  %v476_v34 = vrot.slane %v694_v21, %v1207_v42 }
  0xee   : > { %v397_v24 = vadd.f32 %v395_v7, %v376_v16 }
  0xef   : > { %v382_v38 = vpop.permute.xlu1 %381 }
  0xf0   : > { %v394_v26 = vmul.f32 %v392_v59, %v382_v38  ;;  %v424_v28 = vpop.permute.xlu0 %423  ;;  %v418_v40 = vadd.f32 %v416_v25, %v397_v24  ;;  %v252_v24 = vstv %s683_s19 }
  0xf1   : > { %v436_v14 = vmul.f32 %v434_v19, %v424_v28 }
  0xf2   : > { %v396_v41 = vadd.f32 %v394_v26, %v375_v31 }
  0xf4   : > { %v403_v43 = vpop.permute.xlu1 %402 }
  0xf5   : > { %v415_v32 = vmul.f32 %v413_v3, %v403_v43  ;;  %v470_v38 = vpop.permute.xlu0 %469  ;;  %v696_v43 = vsel %vm503_vm12, 1.0, %v968_v1 }
  0xf6   : > { %v479_v50 = vmul.f32 %v476_v34, %v470_v38  ;;  %v518_v37 = vrot.slane %v696_v43, %v1207_v42  ;;  %v308_v42 = vmul.f32 %v813_v58, %v1190_v30 }
  0xf7   : > { %v417_v47 = vadd.f32 %v415_v32, %v396_v41 }
  0xf9   : > { %v428_v54 = vpop.permute.xlu1 %427  ;;  %v438_v55 = vadd.f32 %v436_v14, %v417_v47 }
  0xfa   : > { %v437_v33 = vmul.f32 %v434_v19, %v428_v54  ;;  %v300_v54 = vrot.slane %v299_v46, 4  ;;  %v487_v59 = vpop.permute.xlu0 %486 }
  0xfc   : > { %v439_v48 = vadd.f32 %v437_v33, %v418_v40  ;;  %v301_v63 = vadd.f32 %v300_v54, %v299_v46 }
  0xfe   : > { %v449_v2 = vpop.permute.xlu1 %448  ;;  %v302_v9 = vrot.slane %v301_v63, 2 }
  0xff   : > { %v458_v44 = vmul.f32 %v455_v20, %v449_v2  ;;  %v499_v2 = vmul.f32 %v497_v52, %v487_v59 }
 0x100   : > { %v303_v16 = vadd.f32 %v302_v9, %v301_v63 }
 0x101   : > { %v460_v49 = vadd.f32 %v458_v44, %v439_v48 }
 0x102   : > { %v445_v17 = vpop.permute.xlu1 %444  ;;  %v304_v21 = vrot.slane %v303_v16, 1 }
 0x103   : > { %v457_v51 = vmul.f32 %v455_v20, %v445_v17  ;;  %v481_v60 = vadd.f32 %v479_v50, %v460_v49  ;;  %v815_v17 = vpop.eup %814  ;;  %v251_v20 = vand.u32 127, %v250_v35  ;;  %v534_v35 = vld [vmem:[#allocation2] sm:$0x1] }
 0x104   : > { %v281_v29 = vmul.f32 0.6931472, %v815_v17  ;;  %v305_v28 = vadd.f32 %v304_v21, %v303_v16 }
 0x105   : > { %v459_v61 = vadd.f32 %v457_v51, %v438_v55  ;;  %v253_v26 = vadd.s32 %v252_v24, %v251_v20 }
 0x106   : > { %v282_v30 = vadd.f32 %v281_v29, %v1181_v22 }
 0x107   : > { %v466_v36 = vpop.permute.xlu1 %465  ;;  %vm254_vm13 = vcmp.lt.s32.totalorder %v253_v26, 8 }
 0x108   : > { %v478_v56 = vmul.f32 %v476_v34, %v466_v36  ;;  %v306_v32 = vsub.f32 %v282_v30, %v305_v28  ;;  %v684_v34 = vsel %vm254_vm13, 1.0, %v968_v1 }
 0x10a   : > { %v480_v0 = vadd.f32 %v478_v56, %v459_v61 }
 0x10c   : > { %v491_v53 = vpop.permute.xlu1 %490  ;;  %v501_v8 = vadd.f32 %v499_v2, %v480_v0 }
 0x10d   : > { %v500_v57 = vmul.f32 %v497_v52, %v491_v53 }
 0x10f   : > { %v502_v3 = vadd.f32 %v500_v57, %v481_v60 }
 0x111   : > { %v512_v62 = vpop.permute.xlu1 %511 }
 0x112   : > { %v521_v4 = vmul.f32 %v518_v37, %v512_v62 }
 0x114   : > { %v523_v6 = vadd.f32 %v521_v4, %v502_v3 }
 0x115   : > { %v508_v7 = vpop.permute.xlu1 %507 }
 0x116   : > { %v520_v11 = vmul.f32 %v518_v37, %v508_v7  ;;  %v525_v12 = vmul.f32 %v523_v6, %v309_v5 }
 0x118   : > { %v522_v15 = vadd.f32 %v520_v11, %v501_v8  ;;  %v526_v18 = vsel %vm257_vm0, %v525_v12, 0.0  ;;  %vm555_vm0 = vcmp.eq.s32.totalorder %v251_v20, 0 }
 0x119   : > { %vm556_vm1 = vmand %vm554_vm15, %vm555_vm0 }
 0x11a   : > { %v524_v10 = vmul.f32 %v522_v15, %v308_v42 }
 0x11c   : > { %v527_v19 = vadd.f32 %v526_v18, %v524_v10 }
 0x11e   : > { %v528_v23 = vrot.slane %v527_v19, 4 }
 0x120   : > { %v529_v25 = vadd.f32 %v528_v23, %v527_v19 }
 0x122   : > { %v530_v27 = vrot.slane %v529_v25, 2 }
 0x124   : > { %v531_v31 = vadd.f32 %v530_v27, %v529_v25 }
 0x126   : > { %v532_v33 = vrot.slane %v531_v31, 1 }
 0x128   : > { %v533_v13 = vadd.f32 %v532_v33, %v531_v31 }
 0x12a   : > { %v535_v36 = vadd.f32 %v533_v13, %v306_v32 }
 0x12c   : > { %v536_v40 = vmul.f32 %v684_v34, %v535_v36 }
 0x12e   : > { %v537_v41 = vadd.f32 %v536_v40, %v534_v35 }
 0x130   : > { %538 = vst [vmem:[#allocation2] sm:$0x1] %v537_v41 }
 0x137   : > { %v542_v44 = vld [vmem:[#allocation2] sm:$0x1] }
 0x138   : > { %v544_v38 = vsel %vm543_vm14, %v542_v44, 0.0 }
 0x139   : > { %545 = vadd.xlane.f32.xlu0 %v544_v38 }
 0x1c6   : > { %v546_v22 = vpop.xlane.xlu0 %545 }
 0x1c7   : > { %v547_v45 = vrot.slane %v546_v22, 4 }
 0x1c9   : > { %v548_v46 = vadd.f32 %v547_v45, %v546_v22 }
 0x1cb   : > { %v549_v47 = vrot.slane %v548_v46, 2 }
 0x1cd   : > { %v550_v14 = vadd.f32 %v549_v47, %v548_v46 }
 0x1cf   : > { %v551_v48 = vrot.slane %v550_v14, 1 }
 0x1d1   : > { %v552_v43 = vadd.f32 %v551_v48, %v550_v14 }
 0x1d3   : > { %701 = vpush %v552_v43 }
 0x204   : > { %s702_s5 = spop %701 }
 0x205   : > { %v557_v1 = vstv %s702_s5 }
 0x206   : > { %v558_v49 = vsel %vm556_vm1, %v557_v1, 0.0 }
 0x207   : > { %559 = vst [vmem:[%s233_s11] sm:$0xff] %v558_v49 }
 0x208   : > { %887 = shalt.err (!%p884_p0)
}
 0x209   : > { %s888_s28 = scalar_lea.hbm %s1262_s18, 128  ;;  %s892_s25 = scalar_lea.hbm %s1314_s3, 256 }
 0x20a   : > { %p889_p2 = scmp.ne.s32.totalorder %s1262_s18, %s888_s28  ;;  %p893_p5 = scmp.lt.u32.totalorder %s1262_s18, %s1314_s3 }
 0x20b   : > { %p894_p10 = scmp.lt.u32.totalorder %s892_s25, %s888_s28  ;;  %p896_p11 = scmp.lt.u32.totalorder %s888_s28, %s1262_s18 }
 0x20c   : > { %p890_p7 = pnand %p889_p2, %p1335_p13 }
 0x20d   : > { %p895_p9 = por %p894_p10, %p893_p5 }
 0x20e   : > { %p891_p12 = pneg %p890_p7 }
 0x20f   : > { %p897_p4 = por %p896_p11, %p895_p9 }
 0x211   : > { %p898_p1 = pnand %p897_p4, %p891_p12 }
 0x213   : > { %901 = shalt.err (!%p898_p1)
}
 0x214   : > { %709 = dma.vmem_to_hbm [thread:$0]  (%p1335_p13), %s1264_s26, 128, %s1262_s18, %s561_s8  }
 0x215 PF: > { %s586_s10 = sand.u32 1, %s940_s12   ;;  %p1336_p3 = scmp.ne.s32.totalorder %s1326_s24, 0 }
 0x216   : > { %p1337_p6 = scmp.ge.s32.totalorder %s960_s17, 2  ;;  %s587_s11 = scalar_lea.sflag [#allocation5], %s586_s10 }
 0x218   : > { %p720_p8 = pnand %p1337_p6, %p1336_p3 }
 0x21a   : > { %935 = dma.done.wait (!%p720_p8), %s587_s11, 128  }
 0x21b   : > { %937 = vsyncadd (!%p720_p8), %s587_s11, 4294967168  ;;  %s20_s17 = sadd.s32 1, %s960_s17   ;;  %s1338_s12 = smov %s944_s13 }
 0x21c   : > { %p17_p0 = scmp.ge.s32.totalorder %s20_s17, 4   ;;  %s1339_s13 = smov %s948_s14 }
 0x21d   : > { %s1340_s14 = smov %s1120_s21  ;;  %s1341_s15 = smov %s956_s16 }
 0x21e   : > { %s1342_s16 = smov %s1344_s30  ;;  %19 = sbr.rel (!%p17_p0) target bundleno = 7 (0x7), region = 92 }
 0x225   :  { %592 = vsyncpa [#allocation4], 1 }
 0x226   :  { %594 = vsyncpa [#allocation4 + $0x1], 1 }
 0x227   :  { %595 = vsyncpa [#allocation7], 1 }
 0x228   :  { %596 = vsyncpa [#allocation5], 1 }
 0x229   :  { %598 = vsyncpa [#allocation5 + $0x1], 1 }

</bundles_post_ra>
